<compile_context>
chip_gen: v7x
topology: tpu7x:2x2x1
jax: 0.10.0
libtpu: 0.0.40
codegen_flags: <defaults>
</compile_context>

<pallas_src>
import functools

import jax
import jax.numpy as jnp
from jax.experimental import pallas as pl
from jax.experimental.pallas import tpu as pltpu

LANE = 128


def _round_up(n, m):
    return ((n + m - 1) // m) * m


def _pad2d(a, rows, cols):
    pr, pc = rows - a.shape[0], cols - a.shape[1]
    if pr or pc:
        a = jnp.pad(a, ((0, pr), (0, pc)))
    return a


def mlp_kernel(x_ref,
               w1_ref, b1_ref,
               w2_ref, b2_ref,
               w3_ref, b3_ref,
               w4_ref, b4_ref,
               w5_ref, b5_ref,
               o_ref):
    compute_dtype = x_ref.dtype  # bf16 operands for the MXU

    h = x_ref[...]
    # Layers 1-4: bf16 matmul with f32 accumulation; bias-add + ReLU in f32.
    for w_ref, b_ref in ((w1_ref, b1_ref), (w2_ref, b2_ref),
                         (w3_ref, b3_ref), (w4_ref, b4_ref)):
        acc = jnp.dot(h, w_ref[...], preferred_element_type=jnp.float32)
        acc = acc + b_ref[...]
        h = jnp.maximum(acc, 0.0).astype(compute_dtype)

    # Layer 5: no activation.
    y = jnp.dot(h, w5_ref[...], preferred_element_type=jnp.float32) + b5_ref[...]
    o_ref[...] = y.astype(o_ref.dtype)


def demonstrator_mlp(x, params, *, batch_tile=128,
                     compute_dtype=jnp.bfloat16):
    """Fused 5-layer MLP forward as a single Pallas TPU kernel.

    x: [B, input_dim] float32
    params: dict with w1..w5 ([in, out] == PyTorch W.T) and b1..b5 ([1, out])
    """
    B, in_dim = x.shape
    out_dim = params["w5"].shape[1]

    # ---- Pad batch + feature dims so every operand is (8,128)-aligned. ----
    B_pad = _round_up(max(B, batch_tile), batch_tile)
    x_p = x
    if B_pad != B:
        x_p = jnp.pad(x_p, ((0, B_pad - B), (0, 0)))
    in_pad = _round_up(in_dim, LANE)
    if in_pad != in_dim:
        x_p = jnp.pad(x_p, ((0, 0), (0, in_pad - in_dim)))
    x_p = x_p.astype(compute_dtype)

    flat_params = []
    in_specs = [pl.BlockSpec((batch_tile, in_pad), lambda i: (i, 0))]
    layer_dims = []
    for layer in range(1, 6):
        w = params[f"w{layer}"]
        b = params[f"b{layer}"]
        wi = _round_up(w.shape[0], LANE)
        wo = _round_up(w.shape[1], LANE)
        layer_dims.append((wi, wo))
        w_p = _pad2d(w, wi, wo).astype(compute_dtype)     # bf16 for the MXU
        b_p = _pad2d(b, 1, wo).astype(jnp.float32)        # bias stays f32
        flat_params.extend([w_p, b_p])
        # Resident blocks: same (0, 0) block for every grid step.
        in_specs.append(pl.BlockSpec((wi, wo), lambda i: (0, 0)))
        in_specs.append(pl.BlockSpec((1, wo), lambda i: (0, 0)))

    out_pad = layer_dims[-1][1]
    out_spec = pl.BlockSpec((batch_tile, out_pad), lambda i: (i, 0))

    # ---- Advisory cost estimate for the XLA scheduler. ----
    flops = 2 * B_pad * sum(wi * wo for wi, wo in layer_dims)
    bytes_accessed = (
        x_p.size * x_p.dtype.itemsize
        + sum(int(a.size) * a.dtype.itemsize for a in flat_params)
        + B_pad * out_pad * 4
    )
    cost = pl.CostEstimate(flops=flops, transcendentals=0,
                           bytes_accessed=bytes_accessed)

    out_padded = pl.pallas_call(
        mlp_kernel,
        out_shape=jax.ShapeDtypeStruct((B_pad, out_pad), jnp.float32),
        grid_spec=pltpu.PrefetchScalarGridSpec(
            num_scalar_prefetch=0,
            grid=(B_pad // batch_tile,),
            in_specs=in_specs,
            out_specs=out_spec,
        ),
        compiler_params=pltpu.CompilerParams(
            dimension_semantics=("parallel",)),
        cost_estimate=cost,
    )(x_p, *flat_params)

    # Strip batch / lane padding.
    return out_padded[:B, :out_dim]


def init_params(key, input_dim, hidden_dim, output_dim):
    """Deterministic init mimicking nn.Linear's uniform(-1/sqrt(fan_in), +)."""
    dims = [(input_dim, hidden_dim),
            (hidden_dim, hidden_dim),
            (hidden_dim, hidden_dim),
            (hidden_dim, hidden_dim),
            (hidden_dim, output_dim)]
    params = {}
    for idx, (fan_in, fan_out) in enumerate(dims, start=1):
        key, kw, kb = jax.random.split(key, 3)
        bound = 1.0 / jnp.sqrt(float(fan_in))
        # stored as [in, out] == PyTorch W.T
        params[f"w{idx}"] = jax.random.uniform(
            kw, (fan_in, fan_out), jnp.float32, -bound, bound)
        params[f"b{idx}"] = jax.random.uniform(
            kb, (1, fan_out), jnp.float32, -bound, bound)
    return params


def reference_mlp(x, params):
    h = x
    for layer in range(1, 5):
        h = jnp.maximum(h @ params[f"w{layer}"] + params[f"b{layer}"], 0.0)
    return h @ params["w5"] + params["b5"]


if __name__ == "__main__":
    input_dim, hidden_dim, output_dim = 32, 64, 16
    batch = 256  # 2 batch tiles of 128 -> >=2 parallel grid steps (v7x 2 TCs)

    key = jax.random.PRNGKey(0)
    key, kx = jax.random.split(key)
    x = jax.random.normal(kx, (batch, input_dim), jnp.float32)
    params = init_params(key, input_dim, hidden_dim, output_dim)

    out = demonstrator_mlp(x, params, batch_tile=128)
    out = jax.block_until_ready(out)

    ref = reference_mlp(x, params)
    assert out.shape == (batch, output_dim)
    # bf16 matmul operands (f32 accumulation) -> loosened tolerance vs f32 ref.
    assert jnp.allclose(out, ref, atol=5e-2, rtol=5e-2), "mismatch vs reference"

    print("KERNEL_OK")
</pallas_src>

<mosaic_0001>
module attributes {stable_mosaic.version = 11 : i64} {
  func.func @mlp_kernel(%arg0: i32, %arg1: memref<128x128xbf16, #tpu.memory_space<vmem>>, %arg2: memref<128x128xbf16, #tpu.memory_space<vmem>>, %arg3: memref<1x128xf32, #tpu.memory_space<vmem>>, %arg4: memref<128x128xbf16, #tpu.memory_space<vmem>>, %arg5: memref<1x128xf32, #tpu.memory_space<vmem>>, %arg6: memref<128x128xbf16, #tpu.memory_space<vmem>>, %arg7: memref<1x128xf32, #tpu.memory_space<vmem>>, %arg8: memref<128x128xbf16, #tpu.memory_space<vmem>>, %arg9: memref<1x128xf32, #tpu.memory_space<vmem>>, %arg10: memref<128x128xbf16, #tpu.memory_space<vmem>>, %arg11: memref<1x128xf32, #tpu.memory_space<vmem>>, %arg12: memref<128x128xf32, #tpu.memory_space<vmem>>) attributes {dimension_semantics = [#tpu.dimension_semantics<parallel>], iteration_bounds = array<i64: 2>, scalar_prefetch = 0 : i64, scratch_operands = 0 : i64, tpu.core_type = #tpu.core_type<tc>, window_params = [{transform_indices = @transform_0, window_bounds = array<i64: 128, 128>}, {pipeline_mode = #tpu.pipeline_mode<synchronous>, transform_indices = @transform_1, window_bounds = array<i64: 128, 128>}, {pipeline_mode = #tpu.pipeline_mode<synchronous>, transform_indices = @transform_2, window_bounds = array<i64: 1, 128>}, {pipeline_mode = #tpu.pipeline_mode<synchronous>, transform_indices = @transform_3, window_bounds = array<i64: 128, 128>}, {pipeline_mode = #tpu.pipeline_mode<synchronous>, transform_indices = @transform_4, window_bounds = array<i64: 1, 128>}, {pipeline_mode = #tpu.pipeline_mode<synchronous>, transform_indices = @transform_5, window_bounds = array<i64: 128, 128>}, {pipeline_mode = #tpu.pipeline_mode<synchronous>, transform_indices = @transform_6, window_bounds = array<i64: 1, 128>}, {pipeline_mode = #tpu.pipeline_mode<synchronous>, transform_indices = @transform_7, window_bounds = array<i64: 128, 128>}, {pipeline_mode = #tpu.pipeline_mode<synchronous>, transform_indices = @transform_8, window_bounds = array<i64: 1, 128>}, {pipeline_mode = #tpu.pipeline_mode<synchronous>, transform_indices = @transform_9, window_bounds = array<i64: 128, 128>}, {pipeline_mode = #tpu.pipeline_mode<synchronous>, transform_indices = @transform_10, window_bounds = array<i64: 1, 128>}, {transform_indices = @transform_11, window_bounds = array<i64: 128, 128>}]} {
    %c0 = arith.constant 0 : index
    %c0_0 = arith.constant 0 : index
    %0 = vector.load %arg1[%c0, %c0_0] : memref<128x128xbf16, #tpu.memory_space<vmem>>, vector<128x128xbf16>
    %c0_1 = arith.constant 0 : index
    %c0_2 = arith.constant 0 : index
    %1 = vector.load %arg2[%c0_1, %c0_2] : memref<128x128xbf16, #tpu.memory_space<vmem>>, vector<128x128xbf16>
    %cst = arith.constant dense<0.000000e+00> : vector<128x128xf32>
    %2 = tpu.matmul %0, %1, %cst {dimension_numbers = #tpu.dot_dimension_numbers<[1], [0], [0], [1], [0, 0, 1, 1], [], []>} : vector<128x128xbf16>, vector<128x128xbf16>, vector<128x128xf32> -> vector<128x128xf32>
    %c0_3 = arith.constant 0 : index
    %c0_4 = arith.constant 0 : index
    %3 = vector.load %arg3[%c0_3, %c0_4] : memref<1x128xf32, #tpu.memory_space<vmem>>, vector<1x128xf32>
    %4 = vector.broadcast %3 : vector<1x128xf32> to vector<128x128xf32>
    %5 = arith.addf %2, %4 : vector<128x128xf32>
    %cst_5 = arith.constant 0.000000e+00 : f32
    %6 = vector.broadcast %cst_5 : f32 to vector<128x128xf32>
    %7 = arith.maximumf %5, %6 : vector<128x128xf32>
    %8 = arith.truncf %7 : vector<128x128xf32> to vector<128x128xbf16>
    %c0_6 = arith.constant 0 : index
    %c0_7 = arith.constant 0 : index
    %9 = vector.load %arg4[%c0_6, %c0_7] : memref<128x128xbf16, #tpu.memory_space<vmem>>, vector<128x128xbf16>
    %cst_8 = arith.constant dense<0.000000e+00> : vector<128x128xf32>
    %10 = tpu.matmul %8, %9, %cst_8 {dimension_numbers = #tpu.dot_dimension_numbers<[1], [0], [0], [1], [0, 0, 1, 1], [], []>} : vector<128x128xbf16>, vector<128x128xbf16>, vector<128x128xf32> -> vector<128x128xf32>
    %c0_9 = arith.constant 0 : index
    %c0_10 = arith.constant 0 : index
    %11 = vector.load %arg5[%c0_9, %c0_10] : memref<1x128xf32, #tpu.memory_space<vmem>>, vector<1x128xf32>
    %12 = vector.broadcast %11 : vector<1x128xf32> to vector<128x128xf32>
    %13 = arith.addf %10, %12 : vector<128x128xf32>
    %cst_11 = arith.constant 0.000000e+00 : f32
    %14 = vector.broadcast %cst_11 : f32 to vector<128x128xf32>
    %15 = arith.maximumf %13, %14 : vector<128x128xf32>
    %16 = arith.truncf %15 : vector<128x128xf32> to vector<128x128xbf16>
    %c0_12 = arith.constant 0 : index
    %c0_13 = arith.constant 0 : index
    %17 = vector.load %arg6[%c0_12, %c0_13] : memref<128x128xbf16, #tpu.memory_space<vmem>>, vector<128x128xbf16>
    %cst_14 = arith.constant dense<0.000000e+00> : vector<128x128xf32>
    %18 = tpu.matmul %16, %17, %cst_14 {dimension_numbers = #tpu.dot_dimension_numbers<[1], [0], [0], [1], [0, 0, 1, 1], [], []>} : vector<128x128xbf16>, vector<128x128xbf16>, vector<128x128xf32> -> vector<128x128xf32>
    %c0_15 = arith.constant 0 : index
    %c0_16 = arith.constant 0 : index
    %19 = vector.load %arg7[%c0_15, %c0_16] : memref<1x128xf32, #tpu.memory_space<vmem>>, vector<1x128xf32>
    %20 = vector.broadcast %19 : vector<1x128xf32> to vector<128x128xf32>
    %21 = arith.addf %18, %20 : vector<128x128xf32>
    %cst_17 = arith.constant 0.000000e+00 : f32
    %22 = vector.broadcast %cst_17 : f32 to vector<128x128xf32>
    %23 = arith.maximumf %21, %22 : vector<128x128xf32>
    %24 = arith.truncf %23 : vector<128x128xf32> to vector<128x128xbf16>
    %c0_18 = arith.constant 0 : index
    %c0_19 = arith.constant 0 : index
    %25 = vector.load %arg8[%c0_18, %c0_19] : memref<128x128xbf16, #tpu.memory_space<vmem>>, vector<128x128xbf16>
    %cst_20 = arith.constant dense<0.000000e+00> : vector<128x128xf32>
    %26 = tpu.matmul %24, %25, %cst_20 {dimension_numbers = #tpu.dot_dimension_numbers<[1], [0], [0], [1], [0, 0, 1, 1], [], []>} : vector<128x128xbf16>, vector<128x128xbf16>, vector<128x128xf32> -> vector<128x128xf32>
    %c0_21 = arith.constant 0 : index
    %c0_22 = arith.constant 0 : index
    %27 = vector.load %arg9[%c0_21, %c0_22] : memref<1x128xf32, #tpu.memory_space<vmem>>, vector<1x128xf32>
    %28 = vector.broadcast %27 : vector<1x128xf32> to vector<128x128xf32>
    %29 = arith.addf %26, %28 : vector<128x128xf32>
    %cst_23 = arith.constant 0.000000e+00 : f32
    %30 = vector.broadcast %cst_23 : f32 to vector<128x128xf32>
    %31 = arith.maximumf %29, %30 : vector<128x128xf32>
    %32 = arith.truncf %31 : vector<128x128xf32> to vector<128x128xbf16>
    %c0_24 = arith.constant 0 : index
    %c0_25 = arith.constant 0 : index
    %33 = vector.load %arg10[%c0_24, %c0_25] : memref<128x128xbf16, #tpu.memory_space<vmem>>, vector<128x128xbf16>
    %cst_26 = arith.constant dense<0.000000e+00> : vector<128x128xf32>
    %34 = tpu.matmul %32, %33, %cst_26 {dimension_numbers = #tpu.dot_dimension_numbers<[1], [0], [0], [1], [0, 0, 1, 1], [], []>} : vector<128x128xbf16>, vector<128x128xbf16>, vector<128x128xf32> -> vector<128x128xf32>
    %c0_27 = arith.constant 0 : index
    %c0_28 = arith.constant 0 : index
    %35 = vector.load %arg11[%c0_27, %c0_28] : memref<1x128xf32, #tpu.memory_space<vmem>>, vector<1x128xf32>
    %36 = vector.broadcast %35 : vector<1x128xf32> to vector<128x128xf32>
    %37 = arith.addf %34, %36 : vector<128x128xf32>
    %c0_29 = arith.constant 0 : index
    %c0_30 = arith.constant 0 : index
    %38 = vector.load %arg12[%c0_29, %c0_30] : memref<128x128xf32, #tpu.memory_space<vmem>>, vector<128x128xf32>
    tpu.vector_store %arg12[%c0_29, %c0_30], %37 {strides = array<i32>} : memref<128x128xf32, #tpu.memory_space<vmem>>, vector<128x128xf32>,
    return
  }
  func.func @transform_0(%arg0: i32) -> (i32, i32) {
    %c0_i32 = arith.constant 0 : i32
    %c0_i32_0 = arith.constant 0 : i32
    return %arg0, %c0_i32 : i32, i32
  }
  func.func @transform_1(%arg0: i32) -> (i32, i32) {
    %c0_i32 = arith.constant 0 : i32
    %c0_i32_0 = arith.constant 0 : i32
    %c0_i32_1 = arith.constant 0 : i32
    return %c0_i32, %c0_i32_0 : i32, i32
  }
  func.func @transform_2(%arg0: i32) -> (i32, i32) {
    %c0_i32 = arith.constant 0 : i32
    %c0_i32_0 = arith.constant 0 : i32
    %c0_i32_1 = arith.constant 0 : i32
    return %c0_i32, %c0_i32_0 : i32, i32
  }
  func.func @transform_3(%arg0: i32) -> (i32, i32) {
    %c0_i32 = arith.constant 0 : i32
    %c0_i32_0 = arith.constant 0 : i32
    %c0_i32_1 = arith.constant 0 : i32
    return %c0_i32, %c0_i32_0 : i32, i32
  }
  func.func @transform_4(%arg0: i32) -> (i32, i32) {
    %c0_i32 = arith.constant 0 : i32
    %c0_i32_0 = arith.constant 0 : i32
    %c0_i32_1 = arith.constant 0 : i32
    return %c0_i32, %c0_i32_0 : i32, i32
  }
  func.func @transform_5(%arg0: i32) -> (i32, i32) {
    %c0_i32 = arith.constant 0 : i32
    %c0_i32_0 = arith.constant 0 : i32
    %c0_i32_1 = arith.constant 0 : i32
    return %c0_i32, %c0_i32_0 : i32, i32
  }
  func.func @transform_6(%arg0: i32) -> (i32, i32) {
    %c0_i32 = arith.constant 0 : i32
    %c0_i32_0 = arith.constant 0 : i32
    %c0_i32_1 = arith.constant 0 : i32
    return %c0_i32, %c0_i32_0 : i32, i32
  }
  func.func @transform_7(%arg0: i32) -> (i32, i32) {
    %c0_i32 = arith.constant 0 : i32
    %c0_i32_0 = arith.constant 0 : i32
    %c0_i32_1 = arith.constant 0 : i32
    return %c0_i32, %c0_i32_0 : i32, i32
  }
  func.func @transform_8(%arg0: i32) -> (i32, i32) {
    %c0_i32 = arith.constant 0 : i32
    %c0_i32_0 = arith.constant 0 : i32
    %c0_i32_1 = arith.constant 0 : i32
    return %c0_i32, %c0_i32_0 : i32, i32
  }
  func.func @transform_9(%arg0: i32) -> (i32, i32) {
    %c0_i32 = arith.constant 0 : i32
    %c0_i32_0 = arith.constant 0 : i32
    %c0_i32_1 = arith.constant 0 : i32
    return %c0_i32, %c0_i32_0 : i32, i32
  }
  func.func @transform_10(%arg0: i32) -> (i32, i32) {
    %c0_i32 = arith.constant 0 : i32
    %c0_i32_0 = arith.constant 0 : i32
    %c0_i32_1 = arith.constant 0 : i32
    return %c0_i32, %c0_i32_0 : i32, i32
  }
  func.func @transform_11(%arg0: i32) -> (i32, i32) {
    %c0_i32 = arith.constant 0 : i32
    %c0_i32_0 = arith.constant 0 : i32
    return %arg0, %c0_i32 : i32, i32
  }
}

</mosaic_0001>

<bundles_post_ra>
// kernel: tpu_custom_call.1
= control target key start
LH: loop header
LB: loop body
LE: loop exit
PB: predicated region body
PF: predicated region fallthrough
CT: control target
= control target key end

     0   :  { %s2837_s0 = inlined_call_operand.hbm [shape: bf16[256,128], index: 0, kind: input, shape index: {}]   ;;  %s2838_s1 = inlined_call_operand.hbm [shape: bf16[128,128], index: 1, kind: input, shape index: {}]   ;;  %s2839_s2 = inlined_call_operand.vmem [shape: f32[1,128], index: 2, kind: input, shape index: {}]   ;;  %s2840_s3 = inlined_call_operand.hbm [shape: bf16[128,128], index: 3, kind: input, shape index: {}]   ;;  %s2841_s4 = inlined_call_operand.vmem [shape: f32[1,128], index: 4, kind: input, shape index: {}]   ;;  %s2842_s5 = inlined_call_operand.hbm [shape: bf16[128,128], index: 5, kind: input, shape index: {}]   ;;  %s2843_s6 = inlined_call_operand.vmem [shape: f32[1,128], index: 6, kind: input, shape index: {}]   ;;  %s2844_s7 = inlined_call_operand.hbm [shape: bf16[128,128], index: 7, kind: input, shape index: {}]   ;;  %s2845_s8 = inlined_call_operand.vmem [shape: f32[1,128], index: 8, kind: input, shape index: {}]   ;;  %s2846_s9 = inlined_call_operand.hbm [shape: bf16[128,128], index: 9, kind: input, shape index: {}]   ;;  %s2847_s10 = inlined_call_operand.vmem [shape: f32[1,128], index: 10, kind: input, shape index: {}]   ;;  %s2848_s11 = inlined_call_operand.hbm [shape: f32[256,128], index: 11, kind: output, shape index: {}]  }
   0x1   :  { %2854 = sst [smem:[#allocation19_spill]] %s2838_s1 }
   0x2   :  { %2855 = sst [smem:[#allocation20_spill]] %s2845_s8 }
   0x3   :  { %2856 = sst [smem:[#allocation21_spill]] %s2847_s10 }
   0x4   :  { %2857 = sst [smem:[#allocation22_spill]] %s2848_s11 }
   0x5   :  { %16 = vsyncpa [#allocation3], 0 }
   0x6   :  { %18 = vsyncpa [#allocation3 + $0x1], 0 }
   0x7   :  { %19 = vsyncpa [#allocation6], 0 }
   0x8   :  { %20 = vsyncpa [#allocation9], 0 }
   0x9   :  { %21 = vsyncpa [#allocation12], 0 }
   0xa   :  { %22 = vsyncpa [#allocation4], 0 }
   0xb   :  { %24 = vsyncpa [#allocation4 + $0x1], 0  ;;  %s2437_s17 = smov 0   ;;  %s2439_s18 = smov 0  }
   0xc   :  { %s2441_s19 = smov 0   ;;  %s2443_s20 = smov 0  }
   0xd LB: > { %s2366_s21 = smov [#allocation5]   ;;  %s2458_s23 = sadd.s32 4294967295, %s2364_s20   ;;  %s2364_s20 = sphi %s2443_s20, %s2884_s20   ;;  %s2360_s19 = sphi %s2441_s19, %s2883_s19   ;;  %s2356_s18 = sphi %s2439_s18, %s2882_s18   ;;  %s2352_s17 = sphi %s2437_s17, %s2881_s17  }
   0xe   : > { %s309_s22 = sshll.u32 %s2366_s21, 4  ;;  %p1633_p0 = scmp.ge.s32.totalorder %s2364_s20, 1  ;;  %s2463_s22 = int_to_ptr.vmem [resolvable:$true] %s309_s22 }
   0xf   : > { %p2850_p1 = scmp.eq.s32.totalorder %s2458_s23, 0  ;;  %p297_p2 = scmp.lt.s32.totalorder %s2364_s20, 3 }
  0x10   : > { %s2367_s25 = smov [#allocation8]   ;;  %s2368_s28 = smov [#allocation7]  }
  0x11   : > { %p2465_p3 = pnand %p1633_p0, %p297_p2  ;;  %s341_s26 = sshll.u32 %s2367_s25, 4  ;;  %s2478_s26 = int_to_ptr.vmem [resolvable:$true] %s341_s26 }
  0x12   : > { %s325_s29 = sshll.u32 %s2368_s28, 4  ;;  %s2860_s1 = sld [smem:[#allocation19_spill]]  ;;  %s2480_s29 = int_to_ptr.vmem [resolvable:$true] %s325_s29 }
  0x13   : > { %s2858_s24 = scalar_select %p2465_p3, 1, 0 }
  0x14   : > { %p1991_p5 = pneg %p2465_p3 }
  0x16   : > { %p2474_p6 = pnand %p1991_p5, %p2850_p1 }
  0x18   : > { %s2116_s13 = scalar_lea.hbm %s2860_s1, 1024  ;;  %p2490_p8 = pneg %p2474_p6 }
  0x19   : > { %p2117_p7 = scmp.ne.s32.totalorder %s2860_s1, %s2116_s13  ;;  %p2123_p11 = scmp.lt.u32.totalorder %s2116_s13, %s2860_s1 }
  0x1b   : > { %p2119_p9 = pnand %p2490_p8, %p2117_p7 }
  0x1d   : > { %p2120_p10 = pneg %p2119_p9 }
  0x1f   : > { %p2125_p12 = pnand %p2123_p11, %p2120_p10 }
  0x21   : > { %2128 = shalt.err (!%p2125_p12)
}
  0x22   : > { %s2129_s28 = scalar_lea.vmem %s2463_s22, 1024  ;;  %p2137_p5 = scmp.lt.s32.totalorder %s2463_s22, %s2463_s22 }
  0x23   : > { %p2130_p13 = scmp.ne.s32.totalorder %s2463_s22, %s2129_s28  ;;  %p2138_p4 = scmp.lt.s32.totalorder %s2129_s28, %s2129_s28 }
  0x25   : > { %p2132_p0 = pnand %p2130_p13, %p2490_p8  ;;  %p2139_p7 = por %p2138_p4, %p2137_p5 }
  0x27   : > { %p2133_p2 = pneg %p2132_p0 }
  0x29   : > { %p2140_p9 = pnand %p2139_p7, %p2133_p2 }
  0x2b   : > { %2143 = shalt.err (!%p2140_p9)
}
  0x2c   : > { %s2852_s30 = smov 64   ;;  %s2370_s12 = smov 4  }
  0x2d   : > { %1994 = dma.hbm_to_vmem [thread:$0]  (!%p2474_p6), %s2860_s1, 1024, %s2463_s22, [#allocation6], %s2852_s30, %s2852_s30, %s2370_s12  }
  0x2e   : > { %s2144_s25 = scalar_lea.hbm %s2842_s5, 1024 }
  0x2f   : > { %p2145_p4 = scmp.ne.s32.totalorder %s2842_s5, %s2144_s25  ;;  %p2151_p12 = scmp.lt.u32.totalorder %s2144_s25, %s2842_s5 }
  0x31   : > { %p2147_p10 = pnand %p2145_p4, %p2490_p8 }
  0x33   : > { %p2148_p11 = pneg %p2147_p10 }
  0x35   : > { %p2153_p13 = pnand %p2151_p12, %p2148_p11 }
  0x37   : > { %2156 = shalt.err (!%p2153_p13)
}
  0x38   : > { %s2157_s22 = scalar_lea.vmem %s2478_s26, 1024  ;;  %p2165_p7 = scmp.lt.s32.totalorder %s2478_s26, %s2478_s26 }
  0x39   : > { %p2158_p0 = scmp.ne.s32.totalorder %s2478_s26, %s2157_s22  ;;  %p2166_p9 = scmp.lt.s32.totalorder %s2157_s22, %s2157_s22 }
  0x3b   : > { %p2160_p2 = pnand %p2158_p0, %p2490_p8  ;;  %p2167_p4 = por %p2166_p9, %p2165_p7 }
  0x3d   : > { %p2161_p5 = pneg %p2160_p2 }
  0x3f   : > { %p2168_p10 = pnand %p2167_p4, %p2161_p5 }
  0x41   : > { %2171 = shalt.err (!%p2168_p10)
}
  0x42   : > { %2000 = dma.hbm_to_vmem [thread:$0]  (!%p2474_p6), %s2842_s5, 1024, %s2478_s26, [#allocation9], %s2852_s30, %s2852_s30, %s2370_s12  }
  0x43   : > { %s2172_s14 = scalar_lea.hbm %s2840_s3, 1024 }
  0x44   : > { %p2173_p11 = scmp.ne.s32.totalorder %s2840_s3, %s2172_s14  ;;  %p2179_p0 = scmp.lt.u32.totalorder %s2172_s14, %s2840_s3 }
  0x46   : > { %p2175_p12 = pnand %p2173_p11, %p2490_p8 }
  0x48   : > { %p2176_p13 = pneg %p2175_p12 }
  0x4a   : > { %p2181_p2 = pnand %p2179_p0, %p2176_p13 }
  0x4c   : > { %2184 = shalt.err (!%p2181_p2)
}
  0x4d   : > { %s2185_s26 = scalar_lea.vmem %s2480_s29, 1024  ;;  %p2193_p4 = scmp.lt.s32.totalorder %s2480_s29, %s2480_s29 }
  0x4e   : > { %p2186_p5 = scmp.ne.s32.totalorder %s2480_s29, %s2185_s26  ;;  %p2194_p10 = scmp.lt.s32.totalorder %s2185_s26, %s2185_s26 }
  0x50   : > { %p2188_p7 = pnand %p2186_p5, %p2490_p8  ;;  %p2195_p11 = por %p2194_p10, %p2193_p4 }
  0x52   : > { %p2189_p9 = pneg %p2188_p7 }
  0x54   : > { %p2196_p12 = pnand %p2195_p11, %p2189_p9 }
  0x56   : > { %2199 = shalt.err (!%p2196_p12)
}
  0x57   : > { %1997 = dma.hbm_to_vmem [thread:$0]  (!%p2474_p6), %s2840_s3, 1024, %s2480_s29, [#allocation6], %s2852_s30, %s2852_s30, %s2370_s12  }
  0x58   : > { %s2371_s10 = smov [#allocation10]   ;;  %s2372_s13 = smov [#allocation11]  }
  0x59   : > { %s357_s11 = sshll.u32 %s2371_s10, 4  ;;  %s373_s14 = sshll.u32 %s2372_s13, 4  ;;  %s358_s11 = int_to_ptr.vmem [resolvable:$true] %s357_s11  ;;  %s374_s14 = int_to_ptr.vmem [resolvable:$true] %s373_s14 }
  0x5a   : > { %s2200_s25 = scalar_lea.hbm %s2844_s7, 1024 }
  0x5b   : > { %p2201_p13 = scmp.ne.s32.totalorder %s2844_s7, %s2200_s25  ;;  %p2207_p5 = scmp.lt.u32.totalorder %s2200_s25, %s2844_s7 }
  0x5d   : > { %p2203_p0 = pnand %p2201_p13, %p2490_p8 }
  0x5f   : > { %p2204_p2 = pneg %p2203_p0 }
  0x61   : > { %p2209_p7 = pnand %p2207_p5, %p2204_p2 }
  0x63   : > { %2212 = shalt.err (!%p2209_p7)
}
  0x64   : > { %s2213_s29 = scalar_lea.vmem %s358_s11, 1024  ;;  %p2221_p11 = scmp.lt.s32.totalorder %s358_s11, %s358_s11 }
  0x65   : > { %p2214_p9 = scmp.ne.s32.totalorder %s358_s11, %s2213_s29  ;;  %p2222_p12 = scmp.lt.s32.totalorder %s2213_s29, %s2213_s29 }
  0x67   : > { %p2216_p4 = pnand %p2214_p9, %p2490_p8  ;;  %p2223_p1 = por %p2222_p12, %p2221_p11 }
  0x69   : > { %p2217_p10 = pneg %p2216_p4 }
  0x6b   : > { %p2224_p3 = pnand %p2223_p1, %p2217_p10 }
  0x6d   : > { %2227 = shalt.err (!%p2224_p3)
}
  0x6e   : > { %2003 = dma.hbm_to_vmem [thread:$0]  (!%p2474_p6), %s2844_s7, 1024, %s358_s11, [#allocation9], %s2852_s30, %s2852_s30, %s2370_s12  }
  0x6f   : > { %s2228_s15 = scalar_lea.hbm %s2846_s9, 1024 }
  0x70   : > { %p2229_p1 = scmp.ne.s32.totalorder %s2846_s9, %s2228_s15  ;;  %p2235_p0 = scmp.lt.u32.totalorder %s2228_s15, %s2846_s9 }
  0x72   : > { %p2231_p3 = pnand %p2229_p1, %p2490_p8 }
  0x74   : > { %p2232_p13 = pneg %p2231_p3 }
  0x76   : > { %p2237_p2 = pnand %p2235_p0, %p2232_p13 }
  0x78   : > { %2240 = shalt.err (!%p2237_p2)
}
  0x79   : > { %s2241_s22 = scalar_lea.vmem %s374_s14, 1024  ;;  %p2249_p4 = scmp.lt.s32.totalorder %s374_s14, %s374_s14 }
  0x7a   : > { %p2242_p5 = scmp.ne.s32.totalorder %s374_s14, %s2241_s22  ;;  %p2250_p10 = scmp.lt.s32.totalorder %s2241_s22, %s2241_s22 }
  0x7c   : > { %p2244_p7 = pnand %p2242_p5, %p2490_p8  ;;  %p2251_p11 = por %p2250_p10, %p2249_p4 }
  0x7e   : > { %p2245_p9 = pneg %p2244_p7 }
  0x80   : > { %p2252_p12 = pnand %p2251_p11, %p2245_p9 }
  0x82   : > { %2255 = shalt.err (!%p2252_p12)
}
  0x83   : > { %2006 = dma.hbm_to_vmem [thread:$0]  (!%p2474_p6), %s2846_s9, 1024, %s374_s14, [#allocation12], %s2852_s30, %s2852_s30, %s2370_s12  }
  0x84   : > { %s1632_s27 = sadd.s32 4294967294, %s2364_s20   ;;  %s2610_s16 = sadd.s32 1, %s2364_s20  }
  0x85   : > { %s37_s1 = sadd.s32 1, %s2360_s19  ;;  %s34_s8 = ssub.s32 %s2364_s20, %s2610_s16 }
  0x86   : > { %p44_p8 = scmp.ne.s32.totalorder %s2360_s19, %s2356_s18  ;;  %p35_p1 = scmp.eq.s32.totalorder %s34_s8, 0 }
  0x87   : > { %p45_p3 = scmp.eq.s32.totalorder %s2364_s20, 0  ;;  %p50_p13 = scmp.ne.s32.totalorder %s2356_s18, %s2352_s17 }
  0x88   : > { %p284_p0 = scmp.eq.s32.totalorder %s2458_s23, 1  ;;  %p2862_p5 = scmp.eq.s32.totalorder %s2458_s23, 0 }
  0x89   : > { %s2622_s10 = scalar_select %p35_p1, %s2360_s19, %s37_s1  }
  0x8a   : > { %p46_p2 = por %p45_p3, %p44_p8  ;;  %p2626_p7 = por %p2862_p5, %p50_p13 }
  0x8b   : > { %p2630_p6 = por %p284_p0, %p44_p8  ;;  %p290_p9 = scmp.eq.s32.totalorder %s1632_s27, 1 }
  0x8c   : > { %p2020_p4 = scmp.lt.s32.totalorder %s2364_s20, 2  ;;  %s390_s15 = sand.u32 1, %s2360_s19  }
  0x8d   : > { %s2864_s14 = scalar_select %p2630_p6, 1, 0 }
  0x8e   : > { %p2636_p10 = por %p290_p9, %p50_p13  ;;  %s1640_s25 = sshll.u32 %s390_s15, 6 }
  0x8f   : > { %s1709_s28 = sshll.u32 %s2364_s20, 10  ;;  %s394_s29 = scalar_lea.vmem [#allocation2], %s1640_s25 }
  0x90   : > { %s2865_s21 = scalar_select %p2636_p10, 1, 0 }
  0x91   : > { %s2644_s11 = scalar_lea.hbm %s2837_s0, %s1709_s28  ;;  %s401_s1 = sshll.u32 %s394_s29, 4  ;;  %s2650_s1 = int_to_ptr.vmem [resolvable:$true] %s401_s1 }
  0x92   : > { %p2646_p11 = pnand %p2020_p4, %p46_p2  ;;  %s2652_s8 = scalar_lea.sflag [#allocation3], %s390_s15 }
  0x93   : > { %s2256_s30 = scalar_lea.hbm %s2644_s11, 1024  ;;  %s2261_s26 = scalar_lea.hbm %s2837_s0, 2048 }
  0x94   : > { %p2257_p12 = scmp.ne.s32.totalorder %s2644_s11, %s2256_s30  ;;  %p2258_p8 = pneg %p2646_p11 }
  0x95   : > { %p2262_p13 = scmp.lt.u32.totalorder %s2644_s11, %s2837_s0  ;;  %p2263_p0 = scmp.lt.u32.totalorder %s2261_s26, %s2256_s30 }
  0x96   : > { %p2259_p1 = pnand %p2258_p8, %p2257_p12  ;;  %p2265_p5 = scmp.lt.u32.totalorder %s2256_s30, %s2644_s11 }
  0x97   : > { %p2264_p2 = por %p2263_p0, %p2262_p13 }
  0x98   : > { %p2260_p3 = pneg %p2259_p1 }
  0x99   : > { %p2266_p9 = por %p2265_p5, %p2264_p2 }
  0x9b   : > { %p2267_p4 = pnand %p2266_p9, %p2260_p3 }
  0x9d   : > { %2270 = shalt.err (!%p2267_p4)
}
  0x9e   : > { %s2271_s15 = scalar_lea.vmem %s2650_s1, 1024  ;;  %s2373_s25 = smov [#allocation2]  }
  0x9f   : > { %p2272_p12 = scmp.ne.s32.totalorder %s2650_s1, %s2271_s15  ;;  %s2276_s28 = sshll.u32 %s2373_s25, 4  ;;  %s2277_s28 = int_to_ptr.vmem [resolvable:$false] %s2276_s28 }
  0xa0   : > { %s2278_s22 = scalar_lea.vmem %s2277_s28, 2048  ;;  %p2279_p6 = scmp.lt.s32.totalorder %s2650_s1, %s2277_s28 }
  0xa1   : > { %p2274_p1 = pnand %p2272_p12, %p2258_p8  ;;  %p2280_p13 = scmp.lt.s32.totalorder %s2278_s22, %s2271_s15 }
  0xa3   : > { %p2275_p10 = pneg %p2274_p1  ;;  %p2281_p0 = por %p2280_p13, %p2279_p6 }
  0xa5   : > { %p2282_p2 = pnand %p2281_p0, %p2275_p10 }
  0xa7   : > { %2285 = shalt.err (!%p2282_p2)
}
  0xa8   : > { %s2867_s30 = smov 64   ;;  %p2868_p8 = scmp.ne.s32.totalorder %s2858_s24, 0 }
  0xa9   : > { %2010 = dma.hbm_to_vmem [thread:$0]  (!%p2646_p11), %s2644_s11, 1024, %s2650_s1, %s2652_s8, %s2867_s30, %s2867_s30, %s2370_s12  }
  0xaa   : > { %413 = sbr.rel (%p2868_p8) target bundleno = 1365 (0x555), region = 64  ;;  %s2686_s26 = sand.u32 (!%p2868_p8), 1, %s2356_s18  }
  0xab   : > { %s1644_s29 = sshll.u32 (!%p2868_p8), %s2686_s26, 6  ;;  %s416_s15 = scalar_lea.sflag (!%p2868_p8), [#allocation3], %s2686_s26 }
  0xac   : > { %s2690_s25 = scalar_lea.vmem (!%p2868_p8), [#allocation2], %s1644_s29 }
  0xb1   : > { %2331 = dma.done.wait (%p2626_p7), %s416_s15, 1024  }
  0xb2   : > { %2333 = vsyncadd (%p2626_p7), %s416_s15, 4294966272  ;;  %p2869_p6 = scmp.eq.s32.totalorder %s2458_s23, 0 }
  0xb4   : > { %2335 = dma.done.wait (%p2869_p6), [#allocation6], 2048   ;;  %p2870_p10 = pmov %p2869_p6 }
  0xb5   : > { %p2871_p11 = pmov %p2869_p6 }
  0xb6   : > { %2337 = vsyncadd (%p2870_p10), [#allocation6], 4294965248 }
  0xb7   : > { %2339 = dma.done.wait (%p2871_p11), [#allocation9], 2048   ;;  %p2872_p3 = pmov %p2869_p6 }
  0xb9   : > { %2341 = vsyncadd (%p2872_p3), [#allocation9], 4294965248  ;;  %p2873_p5 = pmov %p2872_p3 }
  0xba   : > { %p2874_p9 = pmov %p2872_p3 }
  0xbb   : > { %2343 = dma.done.wait (%p2873_p5), [#allocation12], 1024  }
  0xbc   : > { %2345 = vsyncadd (%p2874_p9), [#allocation12], 4294966272  ;;  %v2068_v0 = vld [vmem:[#allocation5] sm:$0xff]   ;;  %v2069_v1 = vld [vmem:[#allocation5 + $0x8] sm:$0xff]   ;;  %s2875_s22 = sld [smem:[#allocation20_spill]]  ;;  %s1650_s30 = sshll.u32 %s2686_s26, 7 }
  0xbd   : > { %1791 = vmatprep.subr.bf16.mxu0 %v2068_v0  ;;  %v2070_v2 = vld [vmem:[#allocation5 + $0x10] sm:$0xff]   ;;  %v2071_v3 = vld [vmem:[#allocation5 + $0x18] sm:$0xff]   ;;  %v2076_v4 = vld [vmem:[%s2690_s25] sm:$0xff]   ;;  %s2768_s24 = scalar_lea.vmem [#allocation13], %s1650_s30  ;;  %s1710_s12 = sshll.u32 %s2458_s23, 11 }
  0xbe   : > { %1792 = vmatpush3.bf16.msra.mxu0 %v2068_v0  ;;  %1807 = vmatprep.mubr.bf16.mxu0 %v2076_v4  ;;  %v2072_v5 = vld [vmem:[#allocation5 + $0x20] sm:$0xff]   ;;  %v2073_v6 = vld [vmem:[#allocation5 + $0x28] sm:$0xff]   ;;  %v2074_v9 = vld [vmem:[#allocation5 + $0x30] sm:$0xff]   ;;  %s1511_s13 = sshll.u32 %s2768_s24, 4  ;;  %s2877_s27 = sld [smem:[#allocation22_spill]]  ;;  %s2790_s13 = int_to_ptr.vmem [resolvable:$true] %s1511_s13 }
  0xbf   : > { %1793 = vmatprep.subr.bf16.mxu0 %v2069_v1  ;;  %v2084_v7 = vld [vmem:[#allocation7] sm:$0xff]   ;;  %v2085_v8 = vld [vmem:[#allocation7 + $0x8] sm:$0xff]   ;;  %v2086_v10 = vld [vmem:[#allocation7 + $0x10] sm:$0xff]   ;;  %s1498_s23 = scalar_lea.sflag [#allocation4], %s2686_s26  ;;  %s2286_s28 = scalar_lea.vmem %s2790_s13, 2048 }
  0xc0   : > { %1823 = vmatprep.subr.bf16.mxu1 %v2084_v7  ;;  %v2075_v11 = vld [vmem:[#allocation5 + $0x38] sm:$0xff]   ;;  %v2088_v13 = vld [vmem:[#allocation7 + $0x20] sm:$0xff]   ;;  %v2077_v14 = vld [vmem:[%s2690_s25 + $0x8] sm:$0xff]   ;;  %p2287_p7 = scmp.ne.s32.totalorder %s2790_s13, %s2286_s28  ;;  %p2878_p4 = scmp.ne.s32.totalorder %s2864_s14, 0 }
  0xc1   : > { %1824 = vmatpush3.bf16.msra.mxu1 %v2084_v7  ;;  %v2087_v12 = vld [vmem:[#allocation7 + $0x18] sm:$0xff]   ;;  %v2078_v15 = vld [vmem:[%s2690_s25 + $0x10] sm:$0xff]   ;;  %v2089_v16 = vld [vmem:[#allocation7 + $0x28] sm:$0xff]  }
  0xc2   : > { %1794 = vmatpush3.bf16.msra.mxu0 %v2069_v1  ;;  %1825 = vmatprep.subr.bf16.mxu1 %v2085_v8  ;;  %v2079_v17 = vld [vmem:[%s2690_s25 + $0x18] sm:$0xff]   ;;  %v2080_v18 = vld [vmem:[%s2690_s25 + $0x20] sm:$0xff]   ;;  %v2081_v19 = vld [vmem:[%s2690_s25 + $0x28] sm:$0xff]   ;;  %p2288_p12 = pnand %p2287_p7, %p2878_p4 }
  0xc3   : > { %1795 = vmatprep.subr.bf16.mxu0 %v2070_v2  ;;  %v2082_v20 = vld [vmem:[%s2690_s25 + $0x30] sm:$0xff]   ;;  %v2083_v21 = vld [vmem:[%s2690_s25 + $0x38] sm:$0xff]   ;;  %v2092_v24 = vld [vmem:[#allocation8] sm:$0xff]   ;;  %s2876_s25 = sld [smem:[#allocation21_spill]] }
  0xc4   : > { %v2090_v22 = vld [vmem:[#allocation7 + $0x30] sm:$0xff]   ;;  %v2091_v23 = vld [vmem:[#allocation7 + $0x38] sm:$0xff]   ;;  %v2093_v25 = vld [vmem:[#allocation8 + $0x8] sm:$0xff]   ;;  %s2788_s8 = scalar_lea.hbm %s2877_s27, %s1710_s12  ;;  %p2289_p1 = pneg %p2288_p12 }
  0xc5   : > { %1826 = vmatpush3.bf16.msra.mxu1 %v2085_v8  ;;  %v2094_v26 = vld [vmem:[#allocation8 + $0x10] sm:$0xff]   ;;  %v2095_v27 = vld [vmem:[#allocation8 + $0x18] sm:$0xff]   ;;  %v2096_v28 = vld [vmem:[#allocation8 + $0x20] sm:$0xff]  }
  0xc6   : > { %1796 = vmatpush3.bf16.msra.mxu0 %v2070_v2  ;;  %1827 = vmatprep.subr.bf16.mxu1 %v2086_v10  ;;  %v2097_v29 = vld [vmem:[#allocation8 + $0x28] sm:$0xff]   ;;  %v1651_v30 = vld [vmem:[%s2839_s2] ss:$0 sm:$0xff] }
  0xc7   : > { %1797 = vmatprep.subr.bf16.mxu0 %v2071_v3 }
  0xc9   : > { %1828 = vmatpush3.bf16.msra.mxu1 %v2086_v10 }
  0xca   : > { %1798 = vmatpush3.bf16.msra.mxu0 %v2071_v3  ;;  %1829 = vmatprep.subr.bf16.mxu1 %v2087_v12 }
  0xcb   : > { %1799 = vmatprep.subr.bf16.mxu0 %v2072_v5 }
  0xcd   : > { %1830 = vmatpush3.bf16.msra.mxu1 %v2087_v12 }
  0xce   : > { %1800 = vmatpush3.bf16.msra.mxu0 %v2072_v5  ;;  %1831 = vmatprep.subr.bf16.mxu1 %v2088_v13 }
  0xcf   : > { %1801 = vmatprep.subr.bf16.mxu0 %v2073_v6 }
  0xd1   : > { %1832 = vmatpush3.bf16.msra.mxu1 %v2088_v13 }
  0xd2   : > { %1802 = vmatpush3.bf16.msra.mxu0 %v2073_v6  ;;  %1833 = vmatprep.subr.bf16.mxu1 %v2089_v16 }
  0xd3   : > { %1803 = vmatprep.subr.bf16.mxu0 %v2074_v9 }
  0xd5   : > { %1834 = vmatpush3.bf16.msra.mxu1 %v2089_v16 }
  0xd6   : > { %1804 = vmatpush3.bf16.msra.mxu0 %v2074_v9  ;;  %1835 = vmatprep.subr.bf16.mxu1 %v2090_v22 }
  0xd7   : > { %1805 = vmatprep.subr.bf16.mxu0 %v2075_v11 }
  0xd9   : > { %1836 = vmatpush3.bf16.msra.mxu1 %v2090_v22 }
  0xda   : > { %1806 = vmatpush3.bf16.msra.mxu0 %v2075_v11  ;;  %1837 = vmatprep.subr.bf16.mxu1 %v2091_v23 }
  0xdb   : > { %1855 = vmatprep.subr.bf16.mxu0 %v2092_v24 }
  0xdd   : > { %1808 = vmatmul.mubr.bf16.vlgmr.msra.gmra.mrb[0].mxu0 %v2077_v14  ;;  %1838 = vmatpush3.bf16.msra.mxu1 %v2091_v23  ;;  %v2098_v23 = vld [vmem:[#allocation8 + $0x30] sm:$0xff]  }
  0xde   : > { %1811 = vmatprep.mubr.bf16.mxu0 %v2078_v15  ;;  %1856 = vmatpush3.bf16.msra.mxu0 %v2092_v24  ;;  %v2099_v24 = vld [vmem:[#allocation8 + $0x38] sm:$0xff]  }
  0xdf   : > { %1857 = vmatprep.subr.bf16.mxu0 %v2093_v25 }
  0xe2   : > { %1858 = vmatpush3.bf16.msra.mxu0 %v2093_v25  ;;  %v2100_v25 = vld [vmem:[#allocation10] sm:$0xff]  }
  0xe3   : > { %1859 = vmatprep.subr.bf16.mxu0 %v2094_v26  ;;  %1887 = vmatprep.subr.bf16.mxu1 %v2100_v25 }
  0xe5   : > { %1812 = vmatmul.mubr.bf16.gmra.mrb[4].mxu0 %v2079_v17 }
  0xe6   : > { %1815 = vmatprep.mubr.bf16.mxu0 %v2080_v18  ;;  %1860 = vmatpush3.bf16.msra.mxu0 %v2094_v26  ;;  %v2101_v26 = vld [vmem:[#allocation10 + $0x8] sm:$0xff]  }
  0xe7   : > { %1861 = vmatprep.subr.bf16.mxu0 %v2095_v27 }
  0xea   : > { %1862 = vmatpush3.bf16.msra.mxu0 %v2095_v27  ;;  %v2102_v27 = vld [vmem:[#allocation10 + $0x10] sm:$0xff]  }
  0xeb   : > { %1863 = vmatprep.subr.bf16.mxu0 %v2096_v28 }
  0xed   : > { %1816 = vmatmul.mubr.bf16.gmra.mrb[8].mxu0 %v2081_v19 }
  0xee   : > { %1819 = vmatprep.mubr.bf16.mxu0 %v2082_v20  ;;  %1864 = vmatpush3.bf16.msra.mxu0 %v2096_v28  ;;  %v2103_v28 = vld [vmem:[#allocation10 + $0x18] sm:$0xff]  }
  0xef   : > { %1865 = vmatprep.subr.bf16.mxu0 %v2097_v29 }
  0xf2   : > { %1866 = vmatpush3.bf16.msra.mxu0 %v2097_v29  ;;  %v2104_v29 = vld [vmem:[#allocation10 + $0x20] sm:$0xff]  }
  0xf3   : > { %1867 = vmatprep.subr.bf16.mxu0 %v2098_v23 }
  0xf5   : > { %1820 = vmatmul.mubr.bf16.gmra.mrb[12].mxu0 %v2083_v21 }
  0xf6   : > { %1868 = vmatpush3.bf16.msra.mxu0 %v2098_v23 }
  0xf7   : > { %1869 = vmatprep.subr.bf16.mxu0 %v2099_v24 }
  0xfa   : > { %1870 = vmatpush3.bf16.msra.mxu0 %v2099_v24  ;;  %v2106_v24 = vld [vmem:[#allocation10 + $0x30] sm:$0xff]  }
 0x1b0   : > { %v1809_v31 = vpop.f32.mrb[0].mxu0 }
 0x1b1   : > { %v659_v32 = vadd.f32 %v1809_v31, %v1651_v30  ;;  %v650_v33 = vpop.f32.mrb[1].mxu0  ;;  %v1668_v31 = vld [vmem:[%s2841_s4] ss:$0 sm:$0xff] }
 0x1b2   : > { %v651_v34 = vadd.f32 %v1651_v30, %v650_v33  ;;  %v1810_v35 = vpop.f32.mrb[2].mxu0 }
 0x1b3   : > { %v662_v36 = vadd.f32 %v1810_v35, %v1651_v30  ;;  %v653_v37 = vpop.f32.mrb[3].mxu0  ;;  %v715_v39 = vmax.f32 %v659_v32, 0.0 }
 0x1b4   : > { %v654_v38 = vadd.f32 %v1651_v30, %v653_v37  ;;  %v713_v41 = vmax.f32 %v651_v34, 0.0 }
 0x1b5   : > { %v716_v40 = vmax.f32 %v662_v36, 0.0 }
 0x1b6   : > { %v714_v42 = vmax.f32 %v654_v38, 0.0 }
 0x1b7   : > { %v730_v43 = vpack.c.bf16 %v716_v40, %v715_v39 }
 0x1b8   : > { %v1813_v44 = vpop.f32.mrb[4].mxu0  ;;  %v729_v45 = vpack.c.bf16 %v714_v42, %v713_v41 }
 0x1b9   : > { %v675_v46 = vadd.f32 %v1813_v44, %v1651_v30  ;;  %v666_v47 = vpop.f32.mrb[5].mxu0 }
 0x1ba   : > { %v667_v48 = vadd.f32 %v1651_v30, %v666_v47  ;;  %v1814_v49 = vpop.f32.mrb[6].mxu0  ;;  %1839 = vmatprep.mubr.bf16.mxu1 %v729_v45 }
 0x1bb   : > { %v678_v50 = vadd.f32 %v1814_v49, %v1651_v30  ;;  %v669_v51 = vpop.f32.mrb[7].mxu0  ;;  %1840 = vmatmul.mubr.bf16.vlgmr.msra.gmra.mrb[0].mxu1 %v730_v43  ;;  %v719_v53 = vmax.f32 %v675_v46, 0.0 }
 0x1bc   : > { %v670_v52 = vadd.f32 %v1651_v30, %v669_v51  ;;  %v717_v55 = vmax.f32 %v667_v48, 0.0  ;;  %1888 = vmatpush3.bf16.msra.mxu1 %v2100_v25  ;;  %v2107_v25 = vld [vmem:[#allocation10 + $0x38] sm:$0xff]  }
 0x1bd   : > { %v720_v54 = vmax.f32 %v678_v50, 0.0  ;;  %1889 = vmatprep.subr.bf16.mxu1 %v2101_v26 }
 0x1be   : > { %v718_v56 = vmax.f32 %v670_v52, 0.0 }
 0x1bf   : > { %v732_v57 = vpack.c.bf16 %v720_v54, %v719_v53 }
 0x1c0   : > { %v731_v58 = vpack.c.bf16 %v718_v56, %v717_v55  ;;  %v1817_v59 = vpop.f32.mrb[8].mxu0  ;;  %1890 = vmatpush3.bf16.msra.mxu1 %v2101_v26  ;;  %v2108_v26 = vld [vmem:[#allocation11] sm:$0xff]  }
 0x1c1   : > { %v691_v60 = vadd.f32 %v1817_v59, %v1651_v30  ;;  %v682_v61 = vpop.f32.mrb[9].mxu0  ;;  %1891 = vmatprep.subr.bf16.mxu1 %v2102_v27  ;;  %1919 = vmatprep.subr.bf16.mxu0 %v2108_v26 }
 0x1c2   : > { %v683_v62 = vadd.f32 %v1651_v30, %v682_v61  ;;  %v1818_v63 = vpop.f32.mrb[10].mxu0  ;;  %1843 = vmatprep.mubr.bf16.mxu1 %v731_v58 }
 0x1c3   : > { %v694_v0 = vadd.f32 %v1818_v63, %v1651_v30  ;;  %v685_v1 = vpop.f32.mrb[11].mxu0  ;;  %1844 = vmatmul.mubr.bf16.gmra.mrb[4].mxu1 %v732_v57  ;;  %v723_v3 = vmax.f32 %v691_v60, 0.0 }
 0x1c4   : > { %v686_v2 = vadd.f32 %v1651_v30, %v685_v1  ;;  %v721_v5 = vmax.f32 %v683_v62, 0.0  ;;  %1892 = vmatpush3.bf16.msra.mxu1 %v2102_v27  ;;  %v2109_v27 = vld [vmem:[#allocation11 + $0x8] sm:$0xff]  }
 0x1c5   : > { %v724_v4 = vmax.f32 %v694_v0, 0.0  ;;  %1893 = vmatprep.subr.bf16.mxu1 %v2103_v28 }
 0x1c6   : > { %v722_v6 = vmax.f32 %v686_v2, 0.0 }
 0x1c7   : > { %v734_v7 = vpack.c.bf16 %v724_v4, %v723_v3 }
 0x1c8   : > { %v733_v8 = vpack.c.bf16 %v722_v6, %v721_v5  ;;  %v1821_v9 = vpop.f32.mrb[12].mxu0  ;;  %1894 = vmatpush3.bf16.msra.mxu1 %v2103_v28  ;;  %v2110_v28 = vld [vmem:[#allocation11 + $0x10] sm:$0xff]  }
 0x1c9   : > { %v707_v10 = vadd.f32 %v1821_v9, %v1651_v30  ;;  %v698_v11 = vpop.f32.mrb[13].mxu0  ;;  %1895 = vmatprep.subr.bf16.mxu1 %v2104_v29 }
 0x1ca   : > { %v699_v12 = vadd.f32 %v1651_v30, %v698_v11  ;;  %v1822_v13 = vpop.f32.mrb[14].mxu0  ;;  %1847 = vmatprep.mubr.bf16.mxu1 %v733_v8 }
 0x1cb   : > { %v710_v14 = vadd.f32 %v1822_v13, %v1651_v30  ;;  %v701_v15 = vpop.f32.mrb[15].mxu0  ;;  %1848 = vmatmul.mubr.bf16.gmra.mrb[8].mxu1 %v734_v7  ;;  %v727_v17 = vmax.f32 %v707_v10, 0.0 }
 0x1cc   : > { %v702_v16 = vadd.f32 %v1651_v30, %v701_v15  ;;  %v725_v19 = vmax.f32 %v699_v12, 0.0  ;;  %v2105_v30 = vld [vmem:[#allocation10 + $0x28] sm:$0xff]   ;;  %1896 = vmatpush3.bf16.msra.mxu1 %v2104_v29  ;;  %v2722_v29 = vld [vmem:[#allocation11 + $0x18] sm:$0xff]  }
 0x1cd   : > { %v728_v18 = vmax.f32 %v710_v14, 0.0  ;;  %1897 = vmatprep.subr.bf16.mxu1 %v2105_v30 }
 0x1ce   : > { %v726_v20 = vmax.f32 %v702_v16, 0.0 }
 0x1cf   : > { %v736_v21 = vpack.c.bf16 %v728_v18, %v727_v17 }
 0x1d0   : > { %v735_v22 = vpack.c.bf16 %v726_v20, %v725_v19  ;;  %1898 = vmatpush3.bf16.msra.mxu1 %v2105_v30  ;;  %v2725_v30 = vld [vmem:[#allocation11 + $0x20] sm:$0xff]  }
 0x1d1   : > { %1899 = vmatprep.subr.bf16.mxu1 %v2106_v24 }
 0x1d2   : > { %1851 = vmatprep.mubr.bf16.mxu1 %v735_v22 }
 0x1d3   : > { %1852 = vmatmul.mubr.bf16.gmra.mrb[12].mxu1 %v736_v21 }
 0x1d4   : > { %1900 = vmatpush3.bf16.msra.mxu1 %v2106_v24 }
 0x1d5   : > { %1901 = vmatprep.subr.bf16.mxu1 %v2107_v25 }
 0x1d8   : > { %1902 = vmatpush3.bf16.msra.mxu1 %v2107_v25  ;;  %v2114_v25 = vld [vmem:[#allocation11 + $0x30] sm:$0xff]  }
 0x1d9   : > { %1951 = vmatprep.subr.bf16.mxu1 %v2108_v26 }
 0x28e   : > { %v1841_v32 = vpop.f32.mrb[0].mxu1 }
 0x28f   : > { %v851_v33 = vadd.f32 %v1841_v32, %v1668_v31  ;;  %v842_v34 = vpop.f32.mrb[1].mxu1  ;;  %v2737_v32 = vld [vmem:[%s2843_s6] ss:$0 sm:$0xff] }
 0x290   : > { %v843_v35 = vadd.f32 %v1668_v31, %v842_v34  ;;  %v1842_v36 = vpop.f32.mrb[2].mxu1 }
 0x291   : > { %v854_v37 = vadd.f32 %v1842_v36, %v1668_v31  ;;  %v845_v38 = vpop.f32.mrb[3].mxu1  ;;  %v907_v40 = vmax.f32 %v851_v33, 0.0 }
 0x292   : > { %v846_v39 = vadd.f32 %v1668_v31, %v845_v38  ;;  %v905_v42 = vmax.f32 %v843_v35, 0.0 }
 0x293   : > { %v908_v41 = vmax.f32 %v854_v37, 0.0 }
 0x294   : > { %v906_v43 = vmax.f32 %v846_v39, 0.0 }
 0x295   : > { %v922_v44 = vpack.c.bf16 %v908_v41, %v907_v40 }
 0x296   : > { %v921_v45 = vpack.c.bf16 %v906_v43, %v905_v42  ;;  %v1845_v46 = vpop.f32.mrb[4].mxu1 }
 0x297   : > { %v867_v47 = vadd.f32 %v1845_v46, %v1668_v31  ;;  %v858_v48 = vpop.f32.mrb[5].mxu1 }
 0x298   : > { %v859_v49 = vadd.f32 %v1668_v31, %v858_v48  ;;  %v1846_v50 = vpop.f32.mrb[6].mxu1  ;;  %1871 = vmatprep.mubr.bf16.mxu0 %v921_v45 }
 0x299   : > { %v870_v51 = vadd.f32 %v1846_v50, %v1668_v31  ;;  %v861_v52 = vpop.f32.mrb[7].mxu1  ;;  %1872 = vmatmul.mubr.bf16.vlgmr.msra.gmra.mrb[16].mxu0 %v922_v44  ;;  %v911_v54 = vmax.f32 %v867_v47, 0.0 }
 0x29a   : > { %v862_v53 = vadd.f32 %v1668_v31, %v861_v52  ;;  %v909_v56 = vmax.f32 %v859_v49, 0.0  ;;  %1920 = vmatpush3.bf16.msra.mxu0 %v2108_v26 }
 0x29b   : > { %v912_v55 = vmax.f32 %v870_v51, 0.0  ;;  %1921 = vmatprep.subr.bf16.mxu0 %v2109_v27 }
 0x29c   : > { %v910_v57 = vmax.f32 %v862_v53, 0.0 }
 0x29d   : > { %v924_v58 = vpack.c.bf16 %v912_v55, %v911_v54 }
 0x29e   : > { %v923_v59 = vpack.c.bf16 %v910_v57, %v909_v56  ;;  %v1849_v60 = vpop.f32.mrb[8].mxu1  ;;  %1922 = vmatpush3.bf16.msra.mxu0 %v2109_v27 }
 0x29f   : > { %v883_v61 = vadd.f32 %v1849_v60, %v1668_v31  ;;  %v874_v62 = vpop.f32.mrb[9].mxu1  ;;  %1923 = vmatprep.subr.bf16.mxu0 %v2110_v28 }
 0x2a0   : > { %v875_v63 = vadd.f32 %v1668_v31, %v874_v62  ;;  %v1850_v0 = vpop.f32.mrb[10].mxu1  ;;  %1875 = vmatprep.mubr.bf16.mxu0 %v923_v59 }
 0x2a1   : > { %v886_v1 = vadd.f32 %v1850_v0, %v1668_v31  ;;  %v877_v2 = vpop.f32.mrb[11].mxu1  ;;  %1876 = vmatmul.mubr.bf16.gmra.mrb[20].mxu0 %v924_v58  ;;  %v915_v4 = vmax.f32 %v883_v61, 0.0 }
 0x2a2   : > { %v878_v3 = vadd.f32 %v1668_v31, %v877_v2  ;;  %v913_v6 = vmax.f32 %v875_v63, 0.0  ;;  %1924 = vmatpush3.bf16.msra.mxu0 %v2110_v28 }
 0x2a3   : > { %v916_v5 = vmax.f32 %v886_v1, 0.0  ;;  %1925 = vmatprep.subr.bf16.mxu0 %v2722_v29 }
 0x2a4   : > { %v914_v7 = vmax.f32 %v878_v3, 0.0 }
 0x2a5   : > { %v926_v8 = vpack.c.bf16 %v916_v5, %v915_v4 }
 0x2a6   : > { %v925_v9 = vpack.c.bf16 %v914_v7, %v913_v6  ;;  %v1853_v10 = vpop.f32.mrb[12].mxu1  ;;  %1926 = vmatpush3.bf16.msra.mxu0 %v2722_v29 }
 0x2a7   : > { %v899_v11 = vadd.f32 %v1853_v10, %v1668_v31  ;;  %v890_v12 = vpop.f32.mrb[13].mxu1  ;;  %1927 = vmatprep.subr.bf16.mxu0 %v2725_v30 }
 0x2a8   : > { %v891_v13 = vadd.f32 %v1668_v31, %v890_v12  ;;  %v1854_v14 = vpop.f32.mrb[14].mxu1  ;;  %1879 = vmatprep.mubr.bf16.mxu0 %v925_v9 }
 0x2a9   : > { %v902_v15 = vadd.f32 %v1854_v14, %v1668_v31  ;;  %v893_v16 = vpop.f32.mrb[15].mxu1  ;;  %1880 = vmatmul.mubr.bf16.gmra.mrb[24].mxu0 %v926_v8  ;;  %v919_v18 = vmax.f32 %v899_v11, 0.0 }
 0x2aa   : > { %v894_v17 = vadd.f32 %v1668_v31, %v893_v16  ;;  %v917_v20 = vmax.f32 %v891_v13, 0.0  ;;  %v2729_v31 = vld [vmem:[#allocation11 + $0x28] sm:$0xff]   ;;  %1928 = vmatpush3.bf16.msra.mxu0 %v2725_v30 }
 0x2ab   : > { %v920_v19 = vmax.f32 %v902_v15, 0.0  ;;  %1929 = vmatprep.subr.bf16.mxu0 %v2729_v31 }
 0x2ac   : > { %v918_v21 = vmax.f32 %v894_v17, 0.0 }
 0x2ad   : > { %v928_v22 = vpack.c.bf16 %v920_v19, %v919_v18 }
 0x2ae   : > { %v927_v23 = vpack.c.bf16 %v918_v21, %v917_v20  ;;  %1930 = vmatpush3.bf16.msra.mxu0 %v2729_v31 }
 0x2af   : > { %1931 = vmatprep.subr.bf16.mxu0 %v2114_v25 }
 0x2b0   : > { %1883 = vmatprep.mubr.bf16.mxu0 %v927_v23 }
 0x2b1   : > { %1884 = vmatmul.mubr.bf16.gmra.mrb[28].mxu0 %v928_v22 }
 0x2b2   : > { %1932 = vmatpush3.bf16.msra.mxu0 %v2114_v25 }
 0x36c   : > { %v1873_v33 = vpop.f32.mrb[16].mxu0 }
 0x36d   : > { %v1043_v34 = vadd.f32 %v1873_v33, %v2737_v32  ;;  %v1034_v35 = vpop.f32.mrb[17].mxu0 }
 0x36e   : > { %v1035_v36 = vadd.f32 %v2737_v32, %v1034_v35  ;;  %v1874_v37 = vpop.f32.mrb[18].mxu0 }
 0x36f   : > { %v1046_v38 = vadd.f32 %v1874_v37, %v2737_v32  ;;  %v1037_v39 = vpop.f32.mrb[19].mxu0  ;;  %v1099_v41 = vmax.f32 %v1043_v34, 0.0 }
 0x370   : > { %v1038_v40 = vadd.f32 %v2737_v32, %v1037_v39  ;;  %v1097_v43 = vmax.f32 %v1035_v36, 0.0 }
 0x371   : > { %v1100_v42 = vmax.f32 %v1046_v38, 0.0 }
 0x372   : > { %v1098_v44 = vmax.f32 %v1038_v40, 0.0 }
 0x373   : > { %v1114_v45 = vpack.c.bf16 %v1100_v42, %v1099_v41 }
 0x374   : > { %v1113_v46 = vpack.c.bf16 %v1098_v44, %v1097_v43  ;;  %v1877_v47 = vpop.f32.mrb[20].mxu0 }
 0x375   : > { %v1059_v48 = vadd.f32 %v1877_v47, %v2737_v32  ;;  %v1050_v49 = vpop.f32.mrb[21].mxu0 }
 0x376   : > { %v1051_v50 = vadd.f32 %v2737_v32, %v1050_v49  ;;  %v1878_v51 = vpop.f32.mrb[22].mxu0  ;;  %1903 = vmatprep.mubr.bf16.mxu1 %v1113_v46 }
 0x377   : > { %v1062_v52 = vadd.f32 %v1878_v51, %v2737_v32  ;;  %v1053_v53 = vpop.f32.mrb[23].mxu0  ;;  %1904 = vmatmul.mubr.bf16.vlgmr.msra.gmra.mrb[16].mxu1 %v1114_v45  ;;  %v1103_v55 = vmax.f32 %v1059_v48, 0.0 }
 0x378   : > { %v1054_v54 = vadd.f32 %v2737_v32, %v1053_v53  ;;  %1959 = vmatpush3.bf16.msra.mxu1 %v2108_v26  ;;  %v1101_v57 = vmax.f32 %v1051_v50, 0.0  ;;  %v2115_v26 = vld [vmem:[#allocation11 + $0x38] sm:$0xff]  }
 0x379   : > { %v1104_v56 = vmax.f32 %v1062_v52, 0.0  ;;  %1952 = vmatprep.subr.bf16.mxu1 %v2109_v27  ;;  %1933 = vmatprep.subr.bf16.mxu0 %v2115_v26 }
 0x37a   : > { %v1102_v58 = vmax.f32 %v1054_v54, 0.0  ;;  %1934 = vmatpush3.bf16.msra.mxu0 %v2115_v26 }
 0x37b   : > { %v1116_v59 = vpack.c.bf16 %v1104_v56, %v1103_v55 }
 0x37c   : > { %v1115_v60 = vpack.c.bf16 %v1102_v58, %v1101_v57  ;;  %v1881_v61 = vpop.f32.mrb[24].mxu0  ;;  %1960 = vmatpush3.bf16.msra.mxu1 %v2109_v27  ;;  %v1686_v27 = vld [vmem:[%s2875_s22] ss:$0 sm:$0xff]  ;;  %s2374_s22 = smov [#allocation13]  }
 0x37d   : > { %v1075_v62 = vadd.f32 %v1881_v61, %v2737_v32  ;;  %v1066_v63 = vpop.f32.mrb[25].mxu0  ;;  %1953 = vmatprep.subr.bf16.mxu1 %v2110_v28  ;;  %s2290_s30 = sshll.u32 %s2374_s22, 4  ;;  %s2291_s30 = int_to_ptr.vmem [resolvable:$false] %s2290_s30 }
 0x37e   : > { %v1067_v0 = vadd.f32 %v2737_v32, %v1066_v63  ;;  %v1882_v1 = vpop.f32.mrb[26].mxu0  ;;  %1907 = vmatprep.mubr.bf16.mxu1 %v1115_v60  ;;  %s2292_s29 = scalar_lea.vmem %s2291_s30, 4096  ;;  %p2293_p13 = scmp.lt.s32.totalorder %s2790_s13, %s2291_s30 }
 0x37f   : > { %v1078_v2 = vadd.f32 %v1882_v1, %v2737_v32  ;;  %v1069_v3 = vpop.f32.mrb[27].mxu0  ;;  %1908 = vmatmul.mubr.bf16.gmra.mrb[20].mxu1 %v1116_v59  ;;  %v1107_v5 = vmax.f32 %v1075_v62, 0.0  ;;  %p2294_p0 = scmp.lt.s32.totalorder %s2292_s29, %s2286_s28 }
 0x380   : > { %v1070_v4 = vadd.f32 %v2737_v32, %v1069_v3  ;;  %1961 = vmatpush3.bf16.msra.mxu1 %v2110_v28  ;;  %v1105_v7 = vmax.f32 %v1067_v0, 0.0 }
 0x381   : > { %v1108_v6 = vmax.f32 %v1078_v2, 0.0  ;;  %1954 = vmatprep.subr.bf16.mxu1 %v2722_v29  ;;  %p2295_p2 = por %p2294_p0, %p2293_p13 }
 0x382   : > { %v1106_v8 = vmax.f32 %v1070_v4, 0.0 }
 0x383   : > { %v1118_v9 = vpack.c.bf16 %v1108_v6, %v1107_v5  ;;  %p2296_p8 = pnand %p2295_p2, %p2289_p1 }
 0x384   : > { %v1117_v10 = vpack.c.bf16 %v1106_v8, %v1105_v7  ;;  %v1885_v11 = vpop.f32.mrb[28].mxu0  ;;  %1962 = vmatpush3.bf16.msra.mxu1 %v2722_v29 }
 0x385   : > { %v1091_v12 = vadd.f32 %v1885_v11, %v2737_v32  ;;  %v1082_v13 = vpop.f32.mrb[29].mxu0  ;;  %1955 = vmatprep.subr.bf16.mxu1 %v2725_v30 }
 0x386   : > { %v1083_v14 = vadd.f32 %v2737_v32, %v1082_v13  ;;  %v1886_v15 = vpop.f32.mrb[30].mxu0  ;;  %1911 = vmatprep.mubr.bf16.mxu1 %v1117_v10 }
 0x387   : > { %v1094_v16 = vadd.f32 %v1886_v15, %v2737_v32  ;;  %v1085_v17 = vpop.f32.mrb[31].mxu0  ;;  %1912 = vmatmul.mubr.bf16.gmra.mrb[24].mxu1 %v1118_v9  ;;  %v1111_v19 = vmax.f32 %v1091_v12, 0.0 }
 0x388   : > { %v1086_v18 = vadd.f32 %v2737_v32, %v1085_v17  ;;  %1963 = vmatpush3.bf16.msra.mxu1 %v2725_v30  ;;  %v1109_v21 = vmax.f32 %v1083_v14, 0.0 }
 0x389   : > { %v1112_v20 = vmax.f32 %v1094_v16, 0.0  ;;  %1956 = vmatprep.subr.bf16.mxu1 %v2729_v31 }
 0x38a   : > { %v1110_v22 = vmax.f32 %v1086_v18, 0.0 }
 0x38b   : > { %v1120_v23 = vpack.c.bf16 %v1112_v20, %v1111_v19  ;;  %v1695_v20 = vld [vmem:[%s2876_s25] ss:$0 sm:$0xff] }
 0x38c   : > { %v1119_v24 = vpack.c.bf16 %v1110_v22, %v1109_v21  ;;  %1964 = vmatpush3.bf16.msra.mxu1 %v2729_v31 }
 0x38d   : > { %1957 = vmatprep.subr.bf16.mxu1 %v2114_v25 }
 0x38e   : > { %1915 = vmatprep.mubr.bf16.mxu1 %v1119_v24 }
 0x38f   : > { %1916 = vmatmul.mubr.bf16.gmra.mrb[28].mxu1 %v1120_v23 }
 0x390   : > { %1965 = vmatpush3.bf16.msra.mxu1 %v2114_v25 }
 0x391   : > { %1958 = vmatprep.subr.bf16.mxu1 %v2115_v26 }
 0x394   : > { %1966 = vmatpush3.bf16.msra.mxu1 %v2115_v26 }
 0x44a   : > { %v1905_v28 = vpop.f32.mrb[16].mxu1 }
 0x44b   : > { %v1235_v29 = vadd.f32 %v1905_v28, %v1686_v27  ;;  %v1226_v30 = vpop.f32.mrb[17].mxu1 }
 0x44c   : > { %v1227_v31 = vadd.f32 %v1686_v27, %v1226_v30  ;;  %v1906_v32 = vpop.f32.mrb[18].mxu1 }
 0x44d   : > { %v1238_v33 = vadd.f32 %v1906_v32, %v1686_v27  ;;  %v1229_v34 = vpop.f32.mrb[19].mxu1  ;;  %v1291_v36 = vmax.f32 %v1235_v29, 0.0 }
 0x44e   : > { %v1230_v35 = vadd.f32 %v1686_v27, %v1229_v34  ;;  %v1289_v38 = vmax.f32 %v1227_v31, 0.0 }
 0x44f   : > { %v1292_v37 = vmax.f32 %v1238_v33, 0.0 }
 0x450   : > { %v1290_v39 = vmax.f32 %v1230_v35, 0.0 }
 0x451   : > { %v1306_v40 = vpack.c.bf16 %v1292_v37, %v1291_v36 }
 0x452   : > { %v1305_v41 = vpack.c.bf16 %v1290_v39, %v1289_v38  ;;  %v1909_v42 = vpop.f32.mrb[20].mxu1 }
 0x453   : > { %v1251_v43 = vadd.f32 %v1909_v42, %v1686_v27  ;;  %v1242_v44 = vpop.f32.mrb[21].mxu1 }
 0x454   : > { %v1243_v45 = vadd.f32 %v1686_v27, %v1242_v44  ;;  %v1910_v46 = vpop.f32.mrb[22].mxu1  ;;  %1935 = vmatprep.mubr.bf16.mxu0 %v1305_v41 }
 0x455   : > { %v1254_v47 = vadd.f32 %v1910_v46, %v1686_v27  ;;  %v1245_v48 = vpop.f32.mrb[23].mxu1  ;;  %1936 = vmatmul.mubr.bf16.vlgmr.msra.gmra.mrb[32].mxu0 %v1306_v40  ;;  %v1295_v50 = vmax.f32 %v1251_v43, 0.0 }
 0x456   : > { %v1246_v49 = vadd.f32 %v1686_v27, %v1245_v48  ;;  %v1293_v52 = vmax.f32 %v1243_v45, 0.0 }
 0x457   : > { %v1296_v51 = vmax.f32 %v1254_v47, 0.0 }
 0x458   : > { %v1294_v53 = vmax.f32 %v1246_v49, 0.0 }
 0x459   : > { %v1308_v54 = vpack.c.bf16 %v1296_v51, %v1295_v50 }
 0x45a   : > { %v1307_v55 = vpack.c.bf16 %v1294_v53, %v1293_v52  ;;  %v1913_v56 = vpop.f32.mrb[24].mxu1 }
 0x45b   : > { %v1267_v57 = vadd.f32 %v1913_v56, %v1686_v27  ;;  %v1258_v58 = vpop.f32.mrb[25].mxu1 }
 0x45c   : > { %v1259_v59 = vadd.f32 %v1686_v27, %v1258_v58  ;;  %v1914_v60 = vpop.f32.mrb[26].mxu1  ;;  %1939 = vmatprep.mubr.bf16.mxu0 %v1307_v55 }
 0x45d   : > { %v1270_v61 = vadd.f32 %v1914_v60, %v1686_v27  ;;  %v1261_v62 = vpop.f32.mrb[27].mxu1  ;;  %1940 = vmatmul.mubr.bf16.gmra.mrb[36].mxu0 %v1308_v54  ;;  %v1299_v0 = vmax.f32 %v1267_v57, 0.0 }
 0x45e   : > { %v1262_v63 = vadd.f32 %v1686_v27, %v1261_v62  ;;  %v1297_v2 = vmax.f32 %v1259_v59, 0.0 }
 0x45f   : > { %v1300_v1 = vmax.f32 %v1270_v61, 0.0 }
 0x460   : > { %v1298_v3 = vmax.f32 %v1262_v63, 0.0 }
 0x461   : > { %v1310_v4 = vpack.c.bf16 %v1300_v1, %v1299_v0 }
 0x462   : > { %v1309_v5 = vpack.c.bf16 %v1298_v3, %v1297_v2  ;;  %v1917_v6 = vpop.f32.mrb[28].mxu1 }
 0x463   : > { %v1283_v7 = vadd.f32 %v1917_v6, %v1686_v27  ;;  %v1274_v8 = vpop.f32.mrb[29].mxu1 }
 0x464   : > { %v1275_v9 = vadd.f32 %v1686_v27, %v1274_v8  ;;  %v1918_v10 = vpop.f32.mrb[30].mxu1  ;;  %1943 = vmatprep.mubr.bf16.mxu1 %v1309_v5 }
 0x465   : > { %v1286_v11 = vadd.f32 %v1918_v10, %v1686_v27  ;;  %v1277_v12 = vpop.f32.mrb[31].mxu1  ;;  %1944 = vmatmul.mubr.bf16.vlgmr.msra.gmra.mrb[32].mxu1 %v1310_v4  ;;  %v1303_v14 = vmax.f32 %v1283_v7, 0.0 }
 0x466   : > { %v1278_v13 = vadd.f32 %v1686_v27, %v1277_v12  ;;  %v1301_v16 = vmax.f32 %v1275_v9, 0.0 }
 0x467   : > { %v1304_v15 = vmax.f32 %v1286_v11, 0.0 }
 0x468   : > { %v1302_v17 = vmax.f32 %v1278_v13, 0.0 }
 0x469   : > { %v1312_v18 = vpack.c.bf16 %v1304_v15, %v1303_v14 }
 0x46a   : > { %v1311_v19 = vpack.c.bf16 %v1302_v17, %v1301_v16 }
 0x46c   : > { %1947 = vmatprep.mubr.bf16.mxu1 %v1311_v19 }
 0x46d   : > { %1948 = vmatmul.mubr.bf16.gmra.mrb[36].mxu1 %v1312_v18 }
 0x528   : > { %v1937_v21 = vpop.f32.mrb[32].mxu0 }
 0x529   : > { %v1427_v22 = vadd.f32 %v1937_v21, %v1695_v20  ;;  %v1418_v23 = vpop.f32.mrb[33].mxu0 }
 0x52a   : > { %v1419_v24 = vadd.f32 %v1695_v20, %v1418_v23  ;;  %v1938_v25 = vpop.f32.mrb[34].mxu0 }
 0x52b   : > { %1483 = vst [vmem:[%s2768_s24 + $0x10] sm:$0xff] %v1427_v22  ;;  %v1430_v26 = vadd.f32 %v1938_v25, %v1695_v20  ;;  %v1421_v27 = vpop.f32.mrb[35].mxu0 }
 0x52c   : > { %1481 = vst [vmem:[%s2768_s24] sm:$0xff] %v1419_v24  ;;  %v1422_v28 = vadd.f32 %v1695_v20, %v1421_v27 }
 0x52d   : > { %1484 = vst [vmem:[%s2768_s24 + $0x18] sm:$0xff] %v1430_v26 }
 0x52e   : > { %1482 = vst [vmem:[%s2768_s24 + $0x8] sm:$0xff] %v1422_v28 }
 0x530   : > { %v1941_v29 = vpop.f32.mrb[36].mxu0 }
 0x531   : > { %v1443_v30 = vadd.f32 %v1941_v29, %v1695_v20  ;;  %v1434_v31 = vpop.f32.mrb[37].mxu0 }
 0x532   : > { %v1435_v32 = vadd.f32 %v1695_v20, %v1434_v31  ;;  %v1942_v33 = vpop.f32.mrb[38].mxu0 }
 0x533   : > { %1487 = vst [vmem:[%s2768_s24 + $0x30] sm:$0xff] %v1443_v30  ;;  %v1446_v34 = vadd.f32 %v1942_v33, %v1695_v20  ;;  %v1437_v35 = vpop.f32.mrb[39].mxu0 }
 0x534   : > { %1485 = vst [vmem:[%s2768_s24 + $0x20] sm:$0xff] %v1435_v32  ;;  %v1438_v36 = vadd.f32 %v1695_v20, %v1437_v35 }
 0x535   : > { %1488 = vst [vmem:[%s2768_s24 + $0x38] sm:$0xff] %v1446_v34 }
 0x536   : > { %1486 = vst [vmem:[%s2768_s24 + $0x28] sm:$0xff] %v1438_v36 }
 0x538   : > { %v1945_v37 = vpop.f32.mrb[32].mxu1 }
 0x539   : > { %v1459_v38 = vadd.f32 %v1945_v37, %v1695_v20  ;;  %v1450_v39 = vpop.f32.mrb[33].mxu1 }
 0x53a   : > { %v1451_v40 = vadd.f32 %v1695_v20, %v1450_v39  ;;  %v1946_v41 = vpop.f32.mrb[34].mxu1 }
 0x53b   : > { %1491 = vst [vmem:[%s2768_s24 + $0x50] sm:$0xff] %v1459_v38  ;;  %v1462_v42 = vadd.f32 %v1946_v41, %v1695_v20  ;;  %v1453_v43 = vpop.f32.mrb[35].mxu1 }
 0x53c   : > { %1489 = vst [vmem:[%s2768_s24 + $0x40] sm:$0xff] %v1451_v40  ;;  %v1454_v44 = vadd.f32 %v1695_v20, %v1453_v43 }
 0x53d   : > { %1492 = vst [vmem:[%s2768_s24 + $0x58] sm:$0xff] %v1462_v42 }
 0x53e   : > { %1490 = vst [vmem:[%s2768_s24 + $0x48] sm:$0xff] %v1454_v44 }
 0x540   : > { %v1949_v45 = vpop.f32.mrb[36].mxu1 }
 0x541   : > { %v1475_v46 = vadd.f32 %v1949_v45, %v1695_v20  ;;  %v1466_v47 = vpop.f32.mrb[37].mxu1 }
 0x542   : > { %v1467_v48 = vadd.f32 %v1695_v20, %v1466_v47  ;;  %v1950_v49 = vpop.f32.mrb[38].mxu1 }
 0x543   : > { %1495 = vst [vmem:[%s2768_s24 + $0x70] sm:$0xff] %v1475_v46  ;;  %v1478_v50 = vadd.f32 %v1950_v49, %v1695_v20  ;;  %v1469_v51 = vpop.f32.mrb[39].mxu1 }
 0x544   : > { %1493 = vst [vmem:[%s2768_s24 + $0x60] sm:$0xff] %v1467_v48  ;;  %v1470_v52 = vadd.f32 %v1695_v20, %v1469_v51 }
 0x545   : > { %1496 = vst [vmem:[%s2768_s24 + $0x78] sm:$0xff] %v1478_v50 }
 0x546   : > { %1494 = vst [vmem:[%s2768_s24 + $0x68] sm:$0xff] %v1470_v52 }
 0x547   : > { %2299 = shalt.err (!%p2296_p8)
}
 0x548   : > { %s2300_s15 = scalar_lea.hbm %s2788_s8, 2048  ;;  %s2304_s12 = scalar_lea.hbm %s2877_s27, 4096 }
 0x549   : > { %p2301_p6 = scmp.ne.s32.totalorder %s2788_s8, %s2300_s15  ;;  %p2305_p3 = scmp.lt.u32.totalorder %s2788_s8, %s2877_s27 }
 0x54a   : > { %p2306_p5 = scmp.lt.u32.totalorder %s2304_s12, %s2300_s15  ;;  %p2308_p7 = scmp.lt.u32.totalorder %s2300_s15, %s2788_s8 }
 0x54b   : > { %p2302_p10 = pnand %p2301_p6, %p2878_p4 }
 0x54c   : > { %p2307_p9 = por %p2306_p5, %p2305_p3 }
 0x54d   : > { %p2303_p11 = pneg %p2302_p10 }
 0x54e   : > { %p2309_p12 = por %p2308_p7, %p2307_p9 }
 0x550   : > { %p2310_p1 = pnand %p2309_p12, %p2303_p11 }
 0x552   : > { %2313 = shalt.err (!%p2310_p1)
}
 0x553   : > { %s2375_s28 = smov 128   ;;  %s2376_s22 = smov 8  }
 0x554   : > { %1989 = dma.vmem_to_hbm [thread:$0]  (%p2878_p4), %s2790_s13, 2048, %s2788_s8, %s1498_s23, %s2375_s28, %s2375_s28, %s2376_s22  }
 0x555 PF: > { %s1526_s30 = sand.u32 1, %s2352_s17   ;;  %p2879_p13 = scmp.ne.s32.totalorder %s2865_s21, 0 }
 0x556   : > { %p2880_p0 = scmp.ge.s32.totalorder %s2364_s20, 2  ;;  %s1527_s29 = scalar_lea.sflag [#allocation4], %s1526_s30 }
 0x558   : > { %p2012_p2 = pnand %p2880_p0, %p2879_p13 }
 0x55a   : > { %2347 = dma.done.wait (!%p2012_p2), %s1527_s29, 2048  }
 0x55b   : > { %2349 = vsyncadd (!%p2012_p2), %s1527_s29, 4294965248  ;;  %p27_p8 = scmp.ge.s32.totalorder %s2610_s16, 4   ;;  %s2881_s17 = smov %s2356_s18 }
 0x55c   : > { %s2882_s18 = smov %s2360_s19  ;;  %s2883_s19 = smov %s2622_s10 }
 0x55d   : > { %s2884_s20 = smov %s2610_s16  ;;  %29 = sbr.rel (!%p27_p8) target bundleno = 13 (0xd), region = 129 }
 0x564   :  { %1532 = vsyncpa [#allocation3], 1 }
 0x565   :  { %1534 = vsyncpa [#allocation3 + $0x1], 1 }
 0x566   :  { %1535 = vsyncpa [#allocation6], 1 }
 0x567   :  { %1536 = vsyncpa [#allocation9], 1 }
 0x568   :  { %1537 = vsyncpa [#allocation12], 1 }
 0x569   :  { %1538 = vsyncpa [#allocation4], 1 }
 0x56a   :  { %1540 = vsyncpa [#allocation4 + $0x1], 1 }

</bundles_post_ra>
